<compile_context>
chip_gen: v7x
topology: tpu7x:2x2x1
jax: 0.10.0
libtpu: 0.0.40
codegen_flags: <defaults>
</compile_context>

<pallas_src>
import numpy as np
import jax
import jax.numpy as jnp
from jax import lax
from jax.experimental import pallas as pl
from jax.experimental.pallas import tpu as pltpu

_SAMPLING_EPS = 1e-5


def _random_bits(seed_i32, row0, col0, shape):
    """Counter-based hash PRNG: uint32 bits keyed on (seed, global row, global col)."""
    rows = (lax.broadcasted_iota(jnp.int32, shape, 0) + row0).astype(jnp.uint32)
    cols = (lax.broadcasted_iota(jnp.int32, shape, 1) + col0).astype(jnp.uint32)
    seed = seed_i32.astype(jnp.uint32)
    x = cols * jnp.uint32(0x85EBCA6B)
    x = x ^ (rows * jnp.uint32(0x9E3779B9))
    x = x ^ (seed * jnp.uint32(0xC2B2AE35))
    # lowbias32 finalizer
    x = x ^ (x >> 16)
    x = x * jnp.uint32(0x7FEB352D)
    x = x ^ (x >> 15)
    x = x * jnp.uint32(0x846CA68B)
    x = x ^ (x >> 16)
    return x


def _sampler_kernel(seed_ref, hasrand_ref,            # SMEM scalar-prefetch
                    logits_ref, temp_ref, greedy_ref,  # inputs
                    probs_ref, logprobs_ref, ids_ref,  # outputs
                    m_sc, l_sc, pm_sc, pidx_sc):       # per-row carries (VMEM)
    i = pl.program_id(0)   # row block
    p = pl.program_id(1)   # pass: 0 = stats, 1 = write outputs
    k = pl.program_id(2)   # vocab tile
    tm, tv = logits_ref.shape

    # ---------------- pass 0: online max / sum-of-exp / running argmax ---------------
    @pl.when(p == 0)
    def _pass0():
        x = logits_ref[...].astype(jnp.float32)                    # (tm, tv)

        @pl.when(k == 0)
        def _init():
            m_sc[...] = jnp.full((tm, 1), -jnp.inf, jnp.float32)
            l_sc[...] = jnp.zeros((tm, 1), jnp.float32)
            pm_sc[...] = jnp.full((tm, 1), -jnp.inf, jnp.float32)
            pidx_sc[...] = jnp.zeros((tm, 1), jnp.int32)

        # online softmax statistics (flash-style rescale of the running sum)
        m_prev = m_sc[...]
        m_new = jnp.maximum(m_prev, jnp.max(x, axis=-1, keepdims=True))
        l_sc[...] = (l_sc[...] * jnp.exp(m_prev - m_new)
                     + jnp.sum(jnp.exp(x - m_new), axis=-1, keepdims=True))
        m_sc[...] = m_new

        def _update_argmax(vals):
            tile_max = jnp.max(vals, axis=-1, keepdims=True)
            col = lax.broadcasted_iota(jnp.int32, vals.shape, 1) + k * tv
            tile_arg = jnp.min(
                jnp.where(vals == tile_max, col, jnp.int32(0x7FFFFFFF)),
                axis=-1, keepdims=True)
            take = tile_max > pm_sc[...]   # strict >: earlier tile wins ties
            pidx_sc[...] = jnp.where(take, tile_arg, pidx_sc[...])
            pm_sc[...] = jnp.where(take, tile_max, pm_sc[...])

        # At least one non-greedy row in this block: temperature + Gumbel-max.
        @pl.when(hasrand_ref[i] > 0)
        def _random_path():
            temp = temp_ref[...]                                   # (tm, 1)
            safe_t = jnp.where(temp < _SAMPLING_EPS, jnp.float32(1.0), temp)
            scaled = x * (jnp.float32(1.0) / safe_t)
            bits = _random_bits(seed_ref[0], i * tm, k * tv, (tm, tv))
            # uniform in [0, 1) via exponent bit trick (no int->float convert)
            u = lax.bitcast_convert_type(
                (bits >> 9) | jnp.uint32(0x3F800000), jnp.float32) - 1.0
            gumbel = -jnp.log(-jnp.log(jnp.maximum(u, jnp.float32(1e-20))))
            is_greedy = greedy_ref[...] > 0                        # (tm, 1)
            perturbed = jnp.where(is_greedy, x, scaled + gumbel)
            _update_argmax(perturbed)

        # All-greedy block: skip PRNG / Gumbel / temperature entirely.
        @pl.when(hasrand_ref[i] == 0)
        def _greedy_path():
            _update_argmax(x)

    # ---------------- pass 1: normalized outputs + sampled ids ----------------------
    @pl.when(p == 1)
    def _pass1():
        x = logits_ref[...].astype(jnp.float32)
        shifted = x - m_sc[...]
        e = jnp.exp(shifted)
        l = l_sc[...]
        probs_ref[...] = (e * (jnp.float32(1.0) / l)).astype(probs_ref.dtype)
        logprobs_ref[...] = (shifted - jnp.log(l)).astype(logprobs_ref.dtype)

        @pl.when(k == 0)
        def _write_ids():
            ids_ref[...] = pidx_sc[...]


def _pick_tile(total, quantum, target):
    """Largest multiple of `quantum` that divides `total` and is <= target, else `total`."""
    if total <= target:
        return total
    cand = (target // quantum) * quantum
    while cand >= quantum:
        if total % cand == 0:
            return cand
        cand -= quantum
    return total


def ascend_sampler_forward(logits, temperatures, greedy_flags, seed,
                           *, tm=None, tv=None, out_dtype=jnp.float32):
    """Fused softmax / log_softmax / sampling for AscendSampler.forward.

    logits:        (T, V) float
    temperatures:  (T, 1) float32  (temperature < 1e-5 is treated as 1.0, per construct_data)
    greedy_flags:  (T, 1) int32    (1 = greedy / argmax, 0 = random sampling)
    seed:          scalar or (1,) int32
    Returns (probs (T,V), logprobs (T,V), sampled_ids int32 (T,1)).
    """
    T, V = logits.shape
    if tm is None:
        tm = _pick_tile(T, 8, 16)        # token rows per block (f32 sublane multiple)
    if tv is None:
        tv = _pick_tile(V, 128, 4096)    # lane-dense vocab tile
    assert T % tm == 0 and (tm == T or tm % 8 == 0), (T, tm)
    assert V % tv == 0 and (tv == V or tv % 128 == 0), (V, tv)

    nb, nk = T // tm, V // tv
    grid = (nb, 2, nk)                   # (row blocks, pass, vocab tiles)

    seed_arr = jnp.asarray(seed, dtype=jnp.int32).reshape(-1)[:1]
    greedy_i32 = jnp.asarray(greedy_flags, dtype=jnp.int32).reshape(T, 1)
    temps_f32 = jnp.asarray(temperatures, dtype=jnp.float32).reshape(T, 1)
    # per-row-block flag: 1 iff any non-greedy row (enables RNG path)
    block_has_random = (jnp.min(greedy_i32.reshape(nb, tm), axis=1) == 0).astype(jnp.int32)

    # VMEM budget tied to the tile footprint (double-buffered in + 2 outs + temporaries)
    block_bytes = tm * tv * 4
    vmem_limit = int(min(48 * 2**20, max(16 * 2**20, 24 * block_bytes + (1 << 20))))

    grid_spec = pltpu.PrefetchScalarGridSpec(
        num_scalar_prefetch=2,
        grid=grid,
        in_specs=[
            pl.BlockSpec((tm, tv), lambda i, p, k, sd, hr: (i, k)),
            pl.BlockSpec((tm, 1), lambda i, p, k, sd, hr: (i, 0)),
            pl.BlockSpec((tm, 1), lambda i, p, k, sd, hr: (i, 0)),
        ],
        out_specs=[
            # (i, p*k): stays on block (i,0) during pass 0 -> no garbage/extra HBM writes,
            # each output block is flushed exactly once (during pass 1).
            pl.BlockSpec((tm, tv), lambda i, p, k, sd, hr: (i, p * k)),
            pl.BlockSpec((tm, tv), lambda i, p, k, sd, hr: (i, p * k)),
            pl.BlockSpec((tm, 1), lambda i, p, k, sd, hr: (i, 0)),
        ],
        scratch_shapes=[
            pltpu.VMEM((tm, 1), jnp.float32),   # running max
            pltpu.VMEM((tm, 1), jnp.float32),   # running sum of exp
            pltpu.VMEM((tm, 1), jnp.float32),   # running perturbed max
            pltpu.VMEM((tm, 1), jnp.int32),     # running argmax
        ],
    )

    out_shapes = (
        jax.ShapeDtypeStruct((T, V), out_dtype),   # probs
        jax.ShapeDtypeStruct((T, V), out_dtype),   # logprobs
        jax.ShapeDtypeStruct((T, 1), jnp.int32),   # sampled token ids
    )

    return pl.pallas_call(
        _sampler_kernel,
        out_shape=out_shapes,
        grid_spec=grid_spec,
        compiler_params=pltpu.CompilerParams(
            dimension_semantics=("parallel", "arbitrary", "arbitrary"),
            vmem_limit_bytes=vmem_limit),
    )(seed_arr, block_has_random, logits, temps_f32, greedy_i32)


# TODO(synk): host-side bookkeeping of AscendSampler (construct_data token-id padding,
# recover_data, _get_logprobs, _build_sampler_output, beam search) and the top-k/top-p/
# min-p/penalty modes of mindie_model.sample are metadata plumbing / optional sampling
# modes not translated here.

if __name__ == "__main__":
    key = jax.random.PRNGKey(0)
    T, V = 16, 512
    logits = jax.random.normal(key, (T, V), dtype=jnp.float32) * 2.0

    # Block 0 (rows 0-7): mixed greedy/random (exercises the RNG path).
    # Block 1 (rows 8-15): all greedy (exercises the RNG-free path).
    temps = jnp.array([1.0, 0.8, 1.2, 0.0, 0.7, 1.0, 1.5, 0.9] + [0.0] * 8,
                      dtype=jnp.float32).reshape(T, 1)
    greedy = jnp.array([1, 0, 0, 1, 0, 1, 0, 0] + [1] * 8,
                       dtype=jnp.int32).reshape(T, 1)
    seed = jnp.array([1234], dtype=jnp.int32)

    probs, logprobs, ids = ascend_sampler_forward(
        logits, temps, greedy, seed, tm=8, tv=128)   # grid (2, 2, 4): real vocab tiling
    jax.block_until_ready((probs, logprobs, ids))

    # Correctness: softmax / log_softmax / greedy argmax paths.
    ref_probs = jax.nn.softmax(logits.astype(jnp.float32), axis=-1)
    ref_logprobs = jax.nn.log_softmax(logits.astype(jnp.float32), axis=-1)
    np.testing.assert_allclose(np.asarray(probs), np.asarray(ref_probs),
                               rtol=1e-5, atol=1e-5)
    np.testing.assert_allclose(np.asarray(logprobs), np.asarray(ref_logprobs),
                               rtol=1e-5, atol=1e-5)

    ids_np = np.asarray(ids)
    greedy_rows = np.asarray(greedy)[:, 0] > 0
    ref_argmax = np.argmax(np.asarray(logits), axis=-1)
    assert np.all(ids_np[greedy_rows, 0] == ref_argmax[greedy_rows])
    assert np.all((ids_np >= 0) & (ids_np < V))

    print("KERNEL_OK")
</pallas_src>

<mosaic_0001>
module attributes {stable_mosaic.version = 11 : i64} {
  func.func @_sampler_kernel(%arg0: i32, %arg1: i32, %arg2: i32, %arg3: memref<1xi32, #tpu.memory_space<smem>>, %arg4: memref<2xi32, #tpu.memory_space<smem>>, %arg5: memref<8x128xf32, #tpu.memory_space<vmem>>, %arg6: memref<8x1xf32, #tpu.memory_space<vmem>>, %arg7: memref<8x1xi32, #tpu.memory_space<vmem>>, %arg8: memref<8x128xf32, #tpu.memory_space<vmem>>, %arg9: memref<8x128xf32, #tpu.memory_space<vmem>>, %arg10: memref<8x1xi32, #tpu.memory_space<vmem>>, %arg11: memref<8x1xf32, #tpu.memory_space<vmem>>, %arg12: memref<8x1xf32, #tpu.memory_space<vmem>>, %arg13: memref<8x1xf32, #tpu.memory_space<vmem>>, %arg14: memref<8x1xi32, #tpu.memory_space<vmem>>) attributes {dimension_semantics = [#tpu.dimension_semantics<parallel>, #tpu.dimension_semantics<arbitrary>, #tpu.dimension_semantics<arbitrary>], iteration_bounds = array<i64: 2, 2, 4>, scalar_prefetch = 2 : i64, scratch_operands = 4 : i64, tpu.core_type = #tpu.core_type<tc>, window_params = [{transform_indices = @transform_0, window_bounds = array<i64: 8, 128>}, {transform_indices = @transform_1, window_bounds = array<i64: 8, 1>}, {transform_indices = @transform_2, window_bounds = array<i64: 8, 1>}, {transform_indices = @transform_3, window_bounds = array<i64: 8, 128>}, {transform_indices = @transform_4, window_bounds = array<i64: 8, 128>}, {transform_indices = @transform_5, window_bounds = array<i64: 8, 1>}]} {
    %c0_i32 = arith.constant 0 : i32
    %0 = arith.cmpi eq, %arg1, %c0_i32 : i32
    %1 = arith.extui %0 : i1 to i32
    %c0_i32_0 = arith.constant 0 : i32
    %2 = arith.cmpi ne, %1, %c0_i32_0 : i32
    scf.if %2 {
      %c0 = arith.constant 0 : index
      %c0_2 = arith.constant 0 : index
      %6 = vector.load %arg5[%c0, %c0_2] : memref<8x128xf32, #tpu.memory_space<vmem>>, vector<8x128xf32>
      %c0_i32_3 = arith.constant 0 : i32
      %7 = arith.cmpi eq, %arg2, %c0_i32_3 : i32
      %8 = arith.extui %7 : i1 to i32
      %c0_i32_4 = arith.constant 0 : i32
      %9 = arith.cmpi ne, %8, %c0_i32_4 : i32
      scf.if %9 {
        %cst_18 = arith.constant 0xFF800000 : f32
        %36 = vector.broadcast %cst_18 : f32 to vector<8x1xf32>
        %c0_19 = arith.constant 0 : index
        %c0_20 = arith.constant 0 : index
        %37 = vector.load %arg11[%c0_19, %c0_20] : memref<8x1xf32, #tpu.memory_space<vmem>>, vector<8x1xf32>
        tpu.vector_store %arg11[%c0_19, %c0_20], %36 {strides = array<i32>} : memref<8x1xf32, #tpu.memory_space<vmem>>, vector<8x1xf32>,
        %cst_21 = arith.constant 0.000000e+00 : f32
        %38 = vector.broadcast %cst_21 : f32 to vector<8x1xf32>
        %c0_22 = arith.constant 0 : index
        %c0_23 = arith.constant 0 : index
        %39 = vector.load %arg12[%c0_22, %c0_23] : memref<8x1xf32, #tpu.memory_space<vmem>>, vector<8x1xf32>
        tpu.vector_store %arg12[%c0_22, %c0_23], %38 {strides = array<i32>} : memref<8x1xf32, #tpu.memory_space<vmem>>, vector<8x1xf32>,
        %cst_24 = arith.constant 0xFF800000 : f32
        %40 = vector.broadcast %cst_24 : f32 to vector<8x1xf32>
        %c0_25 = arith.constant 0 : index
        %c0_26 = arith.constant 0 : index
        %41 = vector.load %arg13[%c0_25, %c0_26] : memref<8x1xf32, #tpu.memory_space<vmem>>, vector<8x1xf32>
        tpu.vector_store %arg13[%c0_25, %c0_26], %40 {strides = array<i32>} : memref<8x1xf32, #tpu.memory_space<vmem>>, vector<8x1xf32>,
        %c0_i32_27 = arith.constant 0 : i32
        %42 = vector.broadcast %c0_i32_27 : i32 to vector<8x1xi32>
        %c0_28 = arith.constant 0 : index
        %c0_29 = arith.constant 0 : index
        %43 = vector.load %arg14[%c0_28, %c0_29] : memref<8x1xi32, #tpu.memory_space<vmem>>, vector<8x1xi32>
        tpu.vector_store %arg14[%c0_28, %c0_29], %42 {strides = array<i32>} : memref<8x1xi32, #tpu.memory_space<vmem>>, vector<8x1xi32>,
      } else {
      }
      %c0_5 = arith.constant 0 : index
      %c0_6 = arith.constant 0 : index
      %10 = vector.load %arg11[%c0_5, %c0_6] : memref<8x1xf32, #tpu.memory_space<vmem>>, vector<8x1xf32>
      %cst = arith.constant dense<0xFF800000> : vector<8xf32>
      %11 = vector.multi_reduction <maximumf>, %6, %cst [1] : vector<8x128xf32> to vector<8xf32>
      %12 = vector.shape_cast %11 : vector<8xf32> to vector<8x1xf32>
      %13 = arith.maximumf %10, %12 : vector<8x1xf32>
      %c0_7 = arith.constant 0 : index
      %c0_8 = arith.constant 0 : index
      %14 = vector.load %arg12[%c0_7, %c0_8] : memref<8x1xf32, #tpu.memory_space<vmem>>, vector<8x1xf32>
      %15 = arith.subf %10, %13 : vector<8x1xf32>
      %16 = math.exp %15 : vector<8x1xf32>
      %17 = arith.mulf %14, %16 : vector<8x1xf32>
      %18 = vector.broadcast %13 : vector<8x1xf32> to vector<8x128xf32>
      %19 = arith.subf %6, %18 : vector<8x128xf32>
      %20 = math.exp %19 : vector<8x128xf32>
      %cst_9 = arith.constant dense<0.000000e+00> : vector<8xf32>
      %21 = vector.multi_reduction <add>, %20, %cst_9 [1] : vector<8x128xf32> to vector<8xf32>
      %22 = vector.shape_cast %21 : vector<8xf32> to vector<8x1xf32>
      %23 = arith.addf %17, %22 : vector<8x1xf32>
      %c0_10 = arith.constant 0 : index
      %c0_11 = arith.constant 0 : index
      %24 = vector.load %arg12[%c0_10, %c0_11] : memref<8x1xf32, #tpu.memory_space<vmem>>, vector<8x1xf32>
      tpu.vector_store %arg12[%c0_10, %c0_11], %23 {strides = array<i32>} : memref<8x1xf32, #tpu.memory_space<vmem>>, vector<8x1xf32>,
      %c0_12 = arith.constant 0 : index
      %c0_13 = arith.constant 0 : index
      %25 = vector.load %arg11[%c0_12, %c0_13] : memref<8x1xf32, #tpu.memory_space<vmem>>, vector<8x1xf32>
      tpu.vector_store %arg11[%c0_12, %c0_13], %13 {strides = array<i32>} : memref<8x1xf32, #tpu.memory_space<vmem>>, vector<8x1xf32>,
      %26 = arith.index_cast %arg0 : i32 to index
      %27 = memref.load %arg4[%26] : memref<2xi32, #tpu.memory_space<smem>>
      %c0_i32_14 = arith.constant 0 : i32
      %28 = arith.cmpi sgt, %27, %c0_i32_14 : i32
      %29 = arith.extui %28 : i1 to i32
      %c0_i32_15 = arith.constant 0 : i32
      %30 = arith.cmpi ne, %29, %c0_i32_15 : i32
      scf.if %30 {
        %c0_18 = arith.constant 0 : index
        %c0_19 = arith.constant 0 : index
        %36 = vector.load %arg6[%c0_18, %c0_19] : memref<8x1xf32, #tpu.memory_space<vmem>>, vector<8x1xf32>
        %cst_20 = arith.constant 9.99999974E-6 : f32
        %37 = vector.broadcast %cst_20 : f32 to vector<8x1xf32>
        %38 = arith.cmpf olt, %36, %37 : vector<8x1xf32>
        %cst_21 = arith.constant 1.000000e+00 : f32
        %39 = vector.broadcast %cst_21 : f32 to vector<8x1xf32>
        %40 = arith.select %38, %39, %36 : vector<8x1xi1>, vector<8x1xf32>
        %cst_22 = arith.constant 1.000000e+00 : f32
        %41 = vector.broadcast %cst_22 : f32 to vector<8x1xf32>
        %42 = arith.divf %41, %40 : vector<8x1xf32>
        %43 = vector.broadcast %42 : vector<8x1xf32> to vector<8x128xf32>
        %44 = arith.mulf %6, %43 : vector<8x128xf32>
        %c0_23 = arith.constant 0 : index
        %45 = memref.load %arg3[%c0_23] : memref<1xi32, #tpu.memory_space<smem>>
        %c8_i32 = arith.constant 8 : i32
        %46 = arith.muli %arg0, %c8_i32 : i32
        %c128_i32 = arith.constant 128 : i32
        %47 = arith.muli %arg2, %c128_i32 : i32
        %48 = tpu.iota {dimensions = array<i32: 0>} : vector<8x128xi32>
        %49 = vector.broadcast %46 : i32 to vector<8x128xi32>
        %50 = arith.addi %48, %49 : vector<8x128xi32>
        %51 = tpu.iota {dimensions = array<i32: 1>} : vector<8x128xi32>
        %52 = vector.broadcast %47 : i32 to vector<8x128xi32>
        %53 = arith.addi %51, %52 : vector<8x128xi32>
        %c-2048144789_i32 = arith.constant -2048144789 : i32
        %54 = vector.broadcast %c-2048144789_i32 : i32 to vector<8x128xi32>
        %55 = arith.muli %53, %54 : vector<8x128xi32>
        %c-1640531527_i32 = arith.constant -1640531527 : i32
        %56 = vector.broadcast %c-1640531527_i32 : i32 to vector<8x128xi32>
        %57 = arith.muli %50, %56 : vector<8x128xi32>
        %58 = arith.xori %55, %57 : vector<8x128xi32>
        %c-1028477387_i32 = arith.constant -1028477387 : i32
        %59 = arith.muli %45, %c-1028477387_i32 : i32
        %60 = vector.broadcast %59 : i32 to vector<8x128xi32>
        %61 = arith.xori %58, %60 : vector<8x128xi32>
        %c16_i32 = arith.constant 16 : i32
        %62 = vector.broadcast %c16_i32 : i32 to vector<8x128xi32>
        %63 = arith.shrui %61, %62 : vector<8x128xi32>
        %64 = arith.xori %61, %63 : vector<8x128xi32>
        %c2146121005_i32 = arith.constant 2146121005 : i32
        %65 = vector.broadcast %c2146121005_i32 : i32 to vector<8x128xi32>
        %66 = arith.muli %64, %65 : vector<8x128xi32>
        %c15_i32 = arith.constant 15 : i32
        %67 = vector.broadcast %c15_i32 : i32 to vector<8x128xi32>
        %68 = arith.shrui %66, %67 : vector<8x128xi32>
        %69 = arith.xori %66, %68 : vector<8x128xi32>
        %c-2073254261_i32 = arith.constant -2073254261 : i32
        %70 = vector.broadcast %c-2073254261_i32 : i32 to vector<8x128xi32>
        %71 = arith.muli %69, %70 : vector<8x128xi32>
        %c16_i32_24 = arith.constant 16 : i32
        %72 = vector.broadcast %c16_i32_24 : i32 to vector<8x128xi32>
        %73 = arith.shrui %71, %72 : vector<8x128xi32>
        %74 = arith.xori %71, %73 : vector<8x128xi32>
        %c9_i32 = arith.constant 9 : i32
        %75 = vector.broadcast %c9_i32 : i32 to vector<8x128xi32>
        %76 = arith.shrui %74, %75 : vector<8x128xi32>
        %c1065353216_i32 = arith.constant 1065353216 : i32
        %77 = vector.broadcast %c1065353216_i32 : i32 to vector<8x128xi32>
        %78 = arith.ori %76, %77 : vector<8x128xi32>
        %79 = tpu.bitcast %78 : vector<8x128xi32> -> vector<8x128xf32>
        %cst_25 = arith.constant 1.000000e+00 : f32
        %80 = vector.broadcast %cst_25 : f32 to vector<8x128xf32>
        %81 = arith.subf %79, %80 : vector<8x128xf32>
        %cst_26 = arith.constant 9.99999968E-21 : f32
        %82 = vector.broadcast %cst_26 : f32 to vector<8x128xf32>
        %83 = arith.maximumf %81, %82 : vector<8x128xf32>
        %84 = math.log %83 : vector<8x128xf32>
        %cst_27 = arith.constant 0.000000e+00 : f32
        %85 = vector.broadcast %cst_27 : f32 to vector<8x128xf32>
        %86 = arith.subf %85, %84 : vector<8x128xf32>
        %87 = math.log %86 : vector<8x128xf32>
        %cst_28 = arith.constant 0.000000e+00 : f32
        %88 = vector.broadcast %cst_28 : f32 to vector<8x128xf32>
        %89 = arith.subf %88, %87 : vector<8x128xf32>
        %c0_29 = arith.constant 0 : index
        %c0_30 = arith.constant 0 : index
        %90 = vector.load %arg7[%c0_29, %c0_30] : memref<8x1xi32, #tpu.memory_space<vmem>>, vector<8x1xi32>
        %c0_i32_31 = arith.constant 0 : i32
        %91 = vector.broadcast %c0_i32_31 : i32 to vector<8x1xi32>
        %92 = arith.cmpi sgt, %90, %91 : vector<8x1xi32>
        %93 = arith.addf %44, %89 : vector<8x128xf32>
        %94 = vector.shape_cast %92 : vector<8x1xi1> to vector<8x1xi1>
        %95 = vector.broadcast %94 : vector<8x1xi1> to vector<8x128xi1>
        %96 = arith.select %95, %6, %93 : vector<8x128xi1>, vector<8x128xf32>
        %cst_32 = arith.constant dense<0xFF800000> : vector<8xf32>
        %97 = vector.multi_reduction <maximumf>, %96, %cst_32 [1] : vector<8x128xf32> to vector<8xf32>
        %98 = vector.shape_cast %97 : vector<8xf32> to vector<8x1xf32>
        %99 = tpu.iota {dimensions = array<i32: 1>} : vector<8x128xi32>
        %c128_i32_33 = arith.constant 128 : i32
        %100 = arith.muli %arg2, %c128_i32_33 : i32
        %101 = vector.broadcast %100 : i32 to vector<8x128xi32>
        %102 = arith.addi %99, %101 : vector<8x128xi32>
        %103 = vector.broadcast %98 : vector<8x1xf32> to vector<8x128xf32>
        %104 = arith.cmpf oeq, %96, %103 : vector<8x128xf32>
        %c2147483647_i32 = arith.constant 2147483647 : i32
        %105 = vector.broadcast %c2147483647_i32 : i32 to vector<8x128xi32>
        %106 = arith.select %104, %102, %105 : vector<8x128xi1>, vector<8x128xi32>
        %cst_34 = arith.constant dense<2147483647> : vector<8xi32>
        %107 = vector.multi_reduction <minsi>, %106, %cst_34 [1] : vector<8x128xi32> to vector<8xi32>
        %108 = vector.shape_cast %107 : vector<8xi32> to vector<8x1xi32>
        %c0_35 = arith.constant 0 : index
        %c0_36 = arith.constant 0 : index
        %109 = vector.load %arg13[%c0_35, %c0_36] : memref<8x1xf32, #tpu.memory_space<vmem>>, vector<8x1xf32>
        %110 = arith.cmpf ogt, %98, %109 : vector<8x1xf32>
        %c0_37 = arith.constant 0 : index
        %c0_38 = arith.constant 0 : index
        %111 = vector.load %arg14[%c0_37, %c0_38] : memref<8x1xi32, #tpu.memory_space<vmem>>, vector<8x1xi32>
        %112 = arith.select %110, %108, %111 : vector<8x1xi1>, vector<8x1xi32>
        %c0_39 = arith.constant 0 : index
        %c0_40 = arith.constant 0 : index
        %113 = vector.load %arg14[%c0_39, %c0_40] : memref<8x1xi32, #tpu.memory_space<vmem>>, vector<8x1xi32>
        tpu.vector_store %arg14[%c0_39, %c0_40], %112 {strides = array<i32>} : memref<8x1xi32, #tpu.memory_space<vmem>>, vector<8x1xi32>,
        %c0_41 = arith.constant 0 : index
        %c0_42 = arith.constant 0 : index
        %114 = vector.load %arg13[%c0_41, %c0_42] : memref<8x1xf32, #tpu.memory_space<vmem>>, vector<8x1xf32>
        %115 = arith.select %110, %98, %114 : vector<8x1xi1>, vector<8x1xf32>
        %c0_43 = arith.constant 0 : index
        %c0_44 = arith.constant 0 : index
        %116 = vector.load %arg13[%c0_43, %c0_44] : memref<8x1xf32, #tpu.memory_space<vmem>>, vector<8x1xf32>
        tpu.vector_store %arg13[%c0_43, %c0_44], %115 {strides = array<i32>} : memref<8x1xf32, #tpu.memory_space<vmem>>, vector<8x1xf32>,
      } else {
      }
      %31 = arith.index_cast %arg0 : i32 to index
      %32 = memref.load %arg4[%31] : memref<2xi32, #tpu.memory_space<smem>>
      %c0_i32_16 = arith.constant 0 : i32
      %33 = arith.cmpi eq, %32, %c0_i32_16 : i32
      %34 = arith.extui %33 : i1 to i32
      %c0_i32_17 = arith.constant 0 : i32
      %35 = arith.cmpi ne, %34, %c0_i32_17 : i32
      scf.if %35 {
        %cst_18 = arith.constant dense<0xFF800000> : vector<8xf32>
        %36 = vector.multi_reduction <maximumf>, %6, %cst_18 [1] : vector<8x128xf32> to vector<8xf32>
        %37 = vector.shape_cast %36 : vector<8xf32> to vector<8x1xf32>
        %38 = tpu.iota {dimensions = array<i32: 1>} : vector<8x128xi32>
        %c128_i32 = arith.constant 128 : i32
        %39 = arith.muli %arg2, %c128_i32 : i32
        %40 = vector.broadcast %39 : i32 to vector<8x128xi32>
        %41 = arith.addi %38, %40 : vector<8x128xi32>
        %42 = vector.broadcast %37 : vector<8x1xf32> to vector<8x128xf32>
        %43 = arith.cmpf oeq, %6, %42 : vector<8x128xf32>
        %c2147483647_i32 = arith.constant 2147483647 : i32
        %44 = vector.broadcast %c2147483647_i32 : i32 to vector<8x128xi32>
        %45 = arith.select %43, %41, %44 : vector<8x128xi1>, vector<8x128xi32>
        %cst_19 = arith.constant dense<2147483647> : vector<8xi32>
        %46 = vector.multi_reduction <minsi>, %45, %cst_19 [1] : vector<8x128xi32> to vector<8xi32>
        %47 = vector.shape_cast %46 : vector<8xi32> to vector<8x1xi32>
        %c0_20 = arith.constant 0 : index
        %c0_21 = arith.constant 0 : index
        %48 = vector.load %arg13[%c0_20, %c0_21] : memref<8x1xf32, #tpu.memory_space<vmem>>, vector<8x1xf32>
        %49 = arith.cmpf ogt, %37, %48 : vector<8x1xf32>
        %c0_22 = arith.constant 0 : index
        %c0_23 = arith.constant 0 : index
        %50 = vector.load %arg14[%c0_22, %c0_23] : memref<8x1xi32, #tpu.memory_space<vmem>>, vector<8x1xi32>
        %51 = arith.select %49, %47, %50 : vector<8x1xi1>, vector<8x1xi32>
        %c0_24 = arith.constant 0 : index
        %c0_25 = arith.constant 0 : index
        %52 = vector.load %arg14[%c0_24, %c0_25] : memref<8x1xi32, #tpu.memory_space<vmem>>, vector<8x1xi32>
        tpu.vector_store %arg14[%c0_24, %c0_25], %51 {strides = array<i32>} : memref<8x1xi32, #tpu.memory_space<vmem>>, vector<8x1xi32>,
        %c0_26 = arith.constant 0 : index
        %c0_27 = arith.constant 0 : index
        %53 = vector.load %arg13[%c0_26, %c0_27] : memref<8x1xf32, #tpu.memory_space<vmem>>, vector<8x1xf32>
        %54 = arith.select %49, %37, %53 : vector<8x1xi1>, vector<8x1xf32>
        %c0_28 = arith.constant 0 : index
        %c0_29 = arith.constant 0 : index
        %55 = vector.load %arg13[%c0_28, %c0_29] : memref<8x1xf32, #tpu.memory_space<vmem>>, vector<8x1xf32>
        tpu.vector_store %arg13[%c0_28, %c0_29], %54 {strides = array<i32>} : memref<8x1xf32, #tpu.memory_space<vmem>>, vector<8x1xf32>,
      } else {
      }
    } else {
    }
    %c1_i32 = arith.constant 1 : i32
    %3 = arith.cmpi eq, %arg1, %c1_i32 : i32
    %4 = arith.extui %3 : i1 to i32
    %c0_i32_1 = arith.constant 0 : i32
    %5 = arith.cmpi ne, %4, %c0_i32_1 : i32
    scf.if %5 {
      %c0 = arith.constant 0 : index
      %c0_2 = arith.constant 0 : index
      %6 = vector.load %arg5[%c0, %c0_2] : memref<8x128xf32, #tpu.memory_space<vmem>>, vector<8x128xf32>
      %c0_3 = arith.constant 0 : index
      %c0_4 = arith.constant 0 : index
      %7 = vector.load %arg11[%c0_3, %c0_4] : memref<8x1xf32, #tpu.memory_space<vmem>>, vector<8x1xf32>
      %8 = vector.broadcast %7 : vector<8x1xf32> to vector<8x128xf32>
      %9 = arith.subf %6, %8 : vector<8x128xf32>
      %10 = math.exp %9 : vector<8x128xf32>
      %c0_5 = arith.constant 0 : index
      %c0_6 = arith.constant 0 : index
      %11 = vector.load %arg12[%c0_5, %c0_6] : memref<8x1xf32, #tpu.memory_space<vmem>>, vector<8x1xf32>
      %cst = arith.constant 1.000000e+00 : f32
      %12 = vector.broadcast %cst : f32 to vector<8x1xf32>
      %13 = arith.divf %12, %11 : vector<8x1xf32>
      %14 = vector.broadcast %13 : vector<8x1xf32> to vector<8x128xf32>
      %15 = arith.mulf %10, %14 : vector<8x128xf32>
      %c0_7 = arith.constant 0 : index
      %c0_8 = arith.constant 0 : index
      %16 = vector.load %arg8[%c0_7, %c0_8] : memref<8x128xf32, #tpu.memory_space<vmem>>, vector<8x128xf32>
      tpu.vector_store %arg8[%c0_7, %c0_8], %15 {strides = array<i32>} : memref<8x128xf32, #tpu.memory_space<vmem>>, vector<8x128xf32>,
      %17 = math.log %11 : vector<8x1xf32>
      %18 = vector.broadcast %17 : vector<8x1xf32> to vector<8x128xf32>
      %19 = arith.subf %9, %18 : vector<8x128xf32>
      %c0_9 = arith.constant 0 : index
      %c0_10 = arith.constant 0 : index
      %20 = vector.load %arg9[%c0_9, %c0_10] : memref<8x128xf32, #tpu.memory_space<vmem>>, vector<8x128xf32>
      tpu.vector_store %arg9[%c0_9, %c0_10], %19 {strides = array<i32>} : memref<8x128xf32, #tpu.memory_space<vmem>>, vector<8x128xf32>,
      %c0_i32_11 = arith.constant 0 : i32
      %21 = arith.cmpi eq, %arg2, %c0_i32_11 : i32
      %22 = arith.extui %21 : i1 to i32
      %c0_i32_12 = arith.constant 0 : i32
      %23 = arith.cmpi ne, %22, %c0_i32_12 : i32
      scf.if %23 {
        %c0_13 = arith.constant 0 : index
        %c0_14 = arith.constant 0 : index
        %24 = vector.load %arg14[%c0_13, %c0_14] : memref<8x1xi32, #tpu.memory_space<vmem>>, vector<8x1xi32>
        %c0_15 = arith.constant 0 : index
        %c0_16 = arith.constant 0 : index
        %25 = vector.load %arg10[%c0_15, %c0_16] : memref<8x1xi32, #tpu.memory_space<vmem>>, vector<8x1xi32>
        tpu.vector_store %arg10[%c0_15, %c0_16], %24 {strides = array<i32>} : memref<8x1xi32, #tpu.memory_space<vmem>>, vector<8x1xi32>,
      } else {
      }
    } else {
    }
    return
  }
  func.func @transform_0(%arg0: i32, %arg1: i32, %arg2: i32, %arg3: memref<1xi32, #tpu.memory_space<smem>>, %arg4: memref<2xi32, #tpu.memory_space<smem>>) -> (i32, i32) {
    %c0_i32 = arith.constant 0 : i32
    return %arg0, %arg2 : i32, i32
  }
  func.func @transform_1(%arg0: i32, %arg1: i32, %arg2: i32, %arg3: memref<1xi32, #tpu.memory_space<smem>>, %arg4: memref<2xi32, #tpu.memory_space<smem>>) -> (i32, i32) {
    %c0_i32 = arith.constant 0 : i32
    %c0_i32_0 = arith.constant 0 : i32
    return %arg0, %c0_i32 : i32, i32
  }
  func.func @transform_2(%arg0: i32, %arg1: i32, %arg2: i32, %arg3: memref<1xi32, #tpu.memory_space<smem>>, %arg4: memref<2xi32, #tpu.memory_space<smem>>) -> (i32, i32) {
    %c0_i32 = arith.constant 0 : i32
    %c0_i32_0 = arith.constant 0 : i32
    return %arg0, %c0_i32 : i32, i32
  }
  func.func @transform_3(%arg0: i32, %arg1: i32, %arg2: i32, %arg3: memref<1xi32, #tpu.memory_space<smem>>, %arg4: memref<2xi32, #tpu.memory_space<smem>>) -> (i32, i32) {
    %0 = arith.muli %arg1, %arg2 : i32
    %c0_i32 = arith.constant 0 : i32
    return %arg0, %0 : i32, i32
  }
  func.func @transform_4(%arg0: i32, %arg1: i32, %arg2: i32, %arg3: memref<1xi32, #tpu.memory_space<smem>>, %arg4: memref<2xi32, #tpu.memory_space<smem>>) -> (i32, i32) {
    %0 = arith.muli %arg1, %arg2 : i32
    %c0_i32 = arith.constant 0 : i32
    return %arg0, %0 : i32, i32
  }
  func.func @transform_5(%arg0: i32, %arg1: i32, %arg2: i32, %arg3: memref<1xi32, #tpu.memory_space<smem>>, %arg4: memref<2xi32, #tpu.memory_space<smem>>) -> (i32, i32) {
    %c0_i32 = arith.constant 0 : i32
    %c0_i32_0 = arith.constant 0 : i32
    return %arg0, %c0_i32 : i32, i32
  }
}

</mosaic_0001>

<bundles_post_ra>
// kernel: tpu_custom_call.1
= control target key start
LH: loop header
LB: loop body
LE: loop exit
PB: predicated region body
PF: predicated region fallthrough
CT: control target
= control target key end

     0   :  { %s1564_s0 = inlined_call_operand.<no memory space> [shape: s32[1], index: 0, kind: input, shape index: {}]   ;;  %s1565_s1 = inlined_call_operand.vmem [shape: s32[2], index: 1, kind: input, shape index: {}]   ;;  %s1566_s2 = inlined_call_operand.hbm [shape: f32[16,512], index: 2, kind: input, shape index: {}]   ;;  %s1567_s3 = inlined_call_operand.vmem [shape: f32[16,1], index: 3, kind: input, shape index: {}]   ;;  %s1568_s4 = inlined_call_operand.vmem [shape: s32[16,1], index: 4, kind: input, shape index: {}]   ;;  %s1569_s5 = inlined_call_operand.hbm [shape: f32[16,512], index: 5, kind: output, shape index: {0}]   ;;  %s1570_s6 = inlined_call_operand.hbm [shape: f32[16,512], index: 6, kind: output, shape index: {1}]   ;;  %s1571_s7 = inlined_call_operand.vmem [shape: s32[16,1], index: 7, kind: output, shape index: {2}]  }
   0x1   :  { %1582 = sst [smem:[#allocation26_spill]] %s1566_s2  ;;  %s14_s28 = sshll.u32 %s1565_s1, 4  ;;  %s15_s28 = int_to_ptr.vmem [resolvable:$true] %s14_s28 }
   0x2   :  { %1583 = sst [smem:[#allocation27_spill]] %s1567_s3  ;;  %s935_s29 = scalar_lea.vmem %s15_s28, 16 }
   0x3   :  { %1584 = sst [smem:[#allocation28_spill]] %s1569_s5  ;;  %p936_p0 = scmp.ne.s32.totalorder %s15_s28, %s935_s29 }
   0x4   :  { %1585 = sst [smem:[#allocation29_spill]] %s1570_s6  ;;  %p940_p1 = scmp.lt.s32.totalorder %s15_s28, %s15_s28 }
   0x5   :  { %13 = sst [smem:[#allocation7]] %s1564_s0  ;;  %p941_p2 = scmp.lt.s32.totalorder %s935_s29, %s935_s29 }
   0x7   :  { %p942_p3 = por %p941_p2, %p940_p1 }
   0x9   :  { %p943_p4 = pnand %p942_p3, %p936_p0 }
   0xb   :  { %946 = shalt.err (!%p943_p4)  }
   0xc   :  { %s1151_s30 = smov [#allocation8]  }
   0xd   :  { %17 = dma.vmem_to_smem %s15_s28, 16, %s1151_s30, [#allocation6] }
   0xe   :  { %1085 = dma.done.wait [#allocation6], 16 }
   0xf   :  { %1086 = vsyncadd [#allocation6], 4294967280 }
  0x10   :  { %19 = sfence }
  0x11   :  { %20 = vsyncpa [#allocation10], 0 }
  0x12   :  { %22 = vsyncpa [#allocation10 + $0x1], 0 }
  0x13   :  { %23 = vsyncpa [#allocation11], 0 }
  0x14   :  { %25 = vsyncpa [#allocation11 + $0x1], 0 }
  0x15   :  { %26 = vsyncpa [#allocation14], 0 }
  0x16   :  { %28 = vsyncpa [#allocation14 + $0x1], 0  ;;  %s1207_s0 = smov 0   ;;  %s1209_s1 = smov 0  }
  0x17   :  { %s1211_s8 = smov 0   ;;  %s1213_s9 = smov 0  }
  0x18   :  { %s1215_s10 = smov 0   ;;  %s1217_s11 = smov 0  }
  0x19   :  { %s1219_s12 = smov 0   ;;  %s1221_s13 = smov 0  }
  0x1a   :  { %s1223_s14 = smov 0   ;;  %s1225_s15 = smov 0  }
  0x1b   :  { %s1227_s16 = smov 0   ;;  %s1229_s17 = smov 0  }
  0x1c   :  { %s1231_s18 = smov 0  }
  0x1d LB: > { %1586 = sst [smem:[#allocation19_spill]] %s1101_s0  ;;  %s753_s19 = sadd.s32 4294967295, %s1149_s18   ;;  %s1149_s18 = sphi %s1231_s18, %s34_s18   ;;  %s1145_s17 = sphi %s1229_s17, %s1619_s17   ;;  %s1141_s16 = sphi %s1227_s16, %s1618_s16   ;;  %s1137_s15 = sphi %s1225_s15, %s1617_s15   ;;  %s1133_s14 = sphi %s1223_s14, %s1616_s14   ;;  %s1129_s13 = sphi %s1221_s13, %s1615_s13   ;;  %s1125_s12 = sphi %s1219_s12, %s1614_s12   ;;  %s1121_s11 = sphi %s1217_s11, %s1625_s11   ;;  %s1117_s10 = sphi %s1215_s10, %s1624_s10   ;;  %s1113_s9 = sphi %s1213_s9, %s1623_s9   ;;  %s1109_s8 = sphi %s1211_s8, %s1622_s8   ;;  %s1105_s1 = sphi %s1209_s1, %s1621_s1   ;;  %s1101_s0 = sphi %s1207_s0, %s1620_s0  }
  0x1e   : > { %1587 = sst [smem:[#allocation20_spill]] %s1137_s15  ;;  %s46_s21 = sadd.s32 1, %s1137_s15 }
  0x1f   : > { %1588 = sst [smem:[#allocation21_spill]] %s1141_s16  ;;  %s49_s22 = sadd.s32 1, %s1141_s16 }
  0x20   : > { %1589 = sst [smem:[#allocation22_spill]] %s1145_s17  ;;  %p47_p5 = scmp.ge.s32.totalorder %s46_s21, 4 }
  0x21   : > { %s53_s23 = sadd.s32 1, %s1145_s17  ;;  %p69_p6 = scmp.ne.s32.totalorder %s1121_s11, %s1117_s10 }
  0x22   : > { %s1627_s21 = smov (%p47_p5, %s46_s21), 0  ;;  %s1629_s22 = smov (!%p47_p5, %s49_s22), %s1141_s16 }
  0x23   : > { %1590 = sst [smem:[#allocation23_spill]] %s1627_s21  ;;  %s58_s25 = ssub.s32 %s1137_s15, %s1627_s21 }
  0x24   : > { %p70_p7 = scmp.eq.s32.totalorder %s1149_s18, 0  ;;  %p51_p8 = scmp.ge.s32.totalorder %s1629_s22, 2 }
  0x25   : > { %p75_p9 = scmp.ne.s32.totalorder %s1117_s10, %s1113_s9  ;;  %p76_p11 = scmp.eq.s32.totalorder %s753_s19, 0 }
  0x26   : > { %p1285_p10 = por %p70_p7, %p69_p6  ;;  %s1631_s22 = smov (%p51_p8, %s1629_s22), 0 }
  0x27   : > { %1592 = sst [smem:[#allocation24_spill]] %s1631_s22  ;;  %s1633_s23 = smov (!%p51_p8, %s53_s23), %s1145_s17 }
  0x28   : > { %p1292_p12 = por %p76_p11, %p75_p9  ;;  %s137_s28 = smul.u32 %s1137_s15, %s1141_s16 }
  0x29   : > { %p55_p13 = scmp.ge.s32.totalorder %s1633_s23, 2  ;;  %s138_s29 = smul.u32 %s1631_s22, %s1627_s21 }
  0x2a   : > { %s144_s30 = sadd.s32 1, %s1109_s8  ;;  %p154_p0 = scmp.ne.s32.totalorder %s1109_s8, %s1105_s1 }
  0x2b   : > { %s1635_s23 = smov (%p55_p13, %s1633_s23), 0  ;;  %s140_s9 = ssub.s32 %s137_s28, %s138_s29 }
  0x2c   : > { %1594 = sst [smem:[#allocation25_spill]] %s1635_s23  ;;  %p155_p1 = scmp.eq.s32.totalorder %s753_s19, 15 }
  0x2d   : > { %s57_s24 = ssub.s32 %s1145_s17, %s1635_s23  ;;  %p160_p2 = scmp.ne.s32.totalorder %s1105_s1, %s1101_s0 }
  0x2e   : > { %s59_s20 = sor.u32 %s58_s25, %s57_s24  ;;  %s141_s16 = sor.u32 %s140_s9, %s57_s24 }
  0x2f   : > { %p60_p3 = scmp.eq.s32.totalorder %s59_s20, 0  ;;  %p142_p4 = scmp.eq.s32.totalorder %s141_s16, 0 }
  0x30   : > { %p1309_p5 = por %p155_p1, %p154_p0  ;;  %s1596_s21 = sadd.s32 4294967294, %s1149_s18  }
  0x31   : > { %p161_p6 = scmp.eq.s32.totalorder %s1596_s21, 15  ;;  %s1597_s6 = sadd.s32 1, %s1121_s11 }
  0x32   : > { %s1595_s22 = scalar_select %p1309_p5, 1, 0 }
  0x33   : > { %s1318_s28 = scalar_select %p60_p3, %s1121_s11, %s1597_s6  }
  0x34   : > { %s1321_s19 = scalar_select %p142_p4, %s1109_s8, %s144_s30  }
  0x35   : > { %p1323_p7 = por %p161_p6, %p160_p2  ;;  %p802_p8 = scmp.lt.s32.totalorder %s1149_s18, 16 }
  0x36   : > { %s237_s16 = sand.u32 1, %s1121_s11   ;;  %s758_s24 = sshll.u32 %s1145_s17, 2 }
  0x37   : > { %s1598_s29 = scalar_select %p1323_p7, 1, 0 }
  0x38   : > { %s757_s20 = sshll.u32 %s237_s16, 3  ;;  %s246_s25 = sadd.s32 %s1137_s15, %s758_s24 }
  0x39   : > { %s241_s9 = scalar_lea.vmem [#allocation9], %s757_s20  ;;  %s759_s0 = sshll.u32 %s246_s25, 7 }
  0x3a   : > { %s250_s23 = sshll.u32 %s241_s9, 4  ;;  %s1599_s2 = sld [smem:[#allocation26_spill]]  ;;  %s1331_s23 = int_to_ptr.vmem [resolvable:$true] %s250_s23 }
  0x3b   : > { %p1340_p9 = pnand %p802_p8, %p1285_p10  ;;  %s238_s20 = scalar_lea.sflag [#allocation10], %s237_s16 }
  0x3d   : > { %p949_p1 = pneg %p1340_p9 }
  0x40   : > { %s1336_s6 = scalar_lea.hbm %s1599_s2, %s759_s0  ;;  %s952_s26 = scalar_lea.hbm %s1599_s2, 1024 }
  0x41   : > { %s947_s24 = scalar_lea.hbm %s1336_s6, 128  ;;  %p953_p10 = scmp.lt.u32.totalorder %s1336_s6, %s1599_s2 }
  0x42   : > { %p948_p0 = scmp.ne.s32.totalorder %s1336_s6, %s947_s24  ;;  %p954_p4 = scmp.lt.u32.totalorder %s952_s26, %s947_s24 }
  0x43   : > { %p956_p8 = scmp.lt.u32.totalorder %s947_s24, %s1336_s6 }
  0x44   : > { %p950_p2 = pnand %p949_p1, %p948_p0  ;;  %p955_p6 = por %p954_p4, %p953_p10 }
  0x46   : > { %p951_p3 = pneg %p950_p2  ;;  %p957_p11 = por %p956_p8, %p955_p6 }
  0x48   : > { %p958_p13 = pnand %p957_p11, %p951_p3 }
  0x4a   : > { %961 = shalt.err (!%p958_p13)
}
  0x4b   : > { %s962_s16 = scalar_lea.vmem %s1331_s23, 128  ;;  %s1152_s21 = smov [#allocation9]  }
  0x4c   : > { %p963_p0 = scmp.ne.s32.totalorder %s1331_s23, %s962_s16  ;;  %s967_s5 = sshll.u32 %s1152_s21, 4  ;;  %s968_s5 = int_to_ptr.vmem [resolvable:$false] %s967_s5 }
  0x4d   : > { %s969_s0 = scalar_lea.vmem %s968_s5, 256  ;;  %p970_p5 = scmp.lt.s32.totalorder %s1331_s23, %s968_s5 }
  0x4e   : > { %p965_p2 = pnand %p963_p0, %p949_p1  ;;  %p971_p10 = scmp.lt.s32.totalorder %s969_s0, %s962_s16 }
  0x50   : > { %p966_p7 = pneg %p965_p2  ;;  %p972_p4 = por %p971_p10, %p970_p5 }
  0x52   : > { %p973_p6 = pnand %p972_p4, %p966_p7 }
  0x54   : > { %976 = shalt.err (!%p973_p6)
}
  0x55   : > { %794 = dma.hbm_to_vmem [thread:$0]  (!%p1340_p9), %s1336_s6, 128, %s1331_s23, %s238_s20  }
  0x56   : > { %p1601_p11 = scmp.lt.s32.totalorder %s1149_s18, 17  ;;  %p1602_p13 = scmp.ge.s32.totalorder %s1149_s18, 1 }
  0x58   : > { %p270_p1 = pnand %p1602_p13, %p1601_p11 }
  0x59   : > { %s275_s24 = sand.u32 (!%p270_p1), 1, %s1117_s10  }
  0x5a   : > { %273 = sbr.rel (%p270_p1) target bundleno = 1492 (0x5d4), region = 32  ;;  %s1376_s26 = sshll.u32 (!%p270_p1), %s275_s24, 3 }
  0x5b   : > { %s276_s25 = scalar_lea.sflag (!%p270_p1), [#allocation10], %s275_s24 }
  0x61   : > { %1088 = dma.done.wait (%p1292_p12), %s276_s25, 128  }
  0x62   : > { %1090 = vsyncadd (%p1292_p12), %s276_s25, 4294967168  ;;  %s1384_s23 = sand.u32 1, %s1105_s1   ;;  %p323_p5 = scmp.lt.s32.totalorder %s1133_s14, 1 }
  0x63   : > { %s762_s6 = sshll.u32 %s1384_s23, 3  ;;  %s1603_s3 = sld [smem:[#allocation27_spill]] }
  0x64   : > { %s324_s30 = scalar_select %p323_p5, %s1133_s14, 1 }
  0x65   : > { %s1403_s17 = scalar_lea.vmem [#allocation12], %s762_s6  ;;  %s1405_s15 = scalar_lea.vmem [#allocation13], %s762_s6 }
  0x66   : > { %s1389_s20 = sshll.u32 %s324_s30, 3  ;;  %p767_p12 = scmp.ne.s32.totalorder %s1129_s13, 0 }
  0x67   : > { %s330_s24 = scalar_lea.vmem %s1568_s4, %s1389_s20  ;;  %s336_s2 = scalar_lea.vmem %s1571_s7, %s1389_s20 }
  0x68   : > { %340 = sbr.rel (%p767_p12) target bundleno = 1291 (0x50b), region = 40  ;;  %s1604_s30 = scalar_lea.vmem (!%p767_p12), [#allocation9], %s1376_s26 }
  0x69   : > { %s326_s5 = scalar_lea.vmem %s1603_s3, %s1389_s20  ;;  %v1410_v0 = vld [vmem:[%s1604_s30] sm:$0xff] (!%p767_p12)  ;;  %p768_p7 = scmp.ne.s32.totalorder (!%p767_p12), %s1125_s12, 0 }
  0x6f   : > { %345 = sbr.rel (%p768_p7) target bundleno = 118 (0x76), region = 44  ;;  %vm346_vm0 = vcmask (!%p768_p7), 7168   ;;  %v1153_v1 = vmov (!%p768_p7), -inf   ;;  %v1154_v2 = vmov (!%p768_p7), 0.0   ;;  %v1155_v3 = vmov (!%p768_p7), 0  }
  0x70   : > { %347 = vst.msk [vmem:[#allocation2] sm:$0xff] (!%p768_p7), %vm346_vm0, %v1153_v1  ;;  %349 = vst.msk [vmem:[#allocation4] sm:$0xff] (!%p768_p7), %vm346_vm0, %v1153_v1 }
  0x71   : > { %348 = vst.msk [vmem:[#allocation3] sm:$0xff] (!%p768_p7), %vm346_vm0, %v1154_v2  ;;  %350 = vst.msk [vmem:[#allocation5] sm:$0xff] (!%p768_p7), %vm346_vm0, %v1155_v3 }
  0x76 PF: > { %352 = vmax.xlane.f32.xlu0 %v1410_v0  ;;  %v1156_v4 = vmov 0   ;;  %vm371_vm1 = vcmask 7168   ;;  %s374_s9 = sld [smem:[#allocation8 + %s1133_s14]] }
  0x77   : > { %915 = vset.pattern.permute.xlu0 %v1156_v4  ;;  %v351_v5 = vld [vmem:[#allocation2] sm:$0xff] }
  0x78   : > { %v355_v15 = vld [vmem:[#allocation3] sm:$0xff] }
  0x7c   : > { %p769_p9 = scmp.le.s32.totalorder %s374_s9, 0 }
  0x7d   : > { %v379_v19 = vld [vmem:[%s326_s5] sm:$0xff] (!%p769_p9)  ;;  %v1157_v20 = vmov (!%p769_p9), 0   ;;  %v393_v25 = vlaneseq (!%p769_p9)  ;;  %s770_s0 = sshll.u32 (!%p769_p9), %s1133_s14, 3  ;;  %s771_s25 = sshll.u32 (!%p769_p9), %s1125_s12, 7  ;;  %v453_v60 = vld [vmem:[#allocation4] sm:$0xff] (!%p769_p9) }
  0x7e   : > { %vm380_vm2 = vcmp.lt.f32.partialorder (!%p769_p9), %v379_v19, 1e-05  ;;  %v426_v22 = vld [vmem:[%s330_s24] sm:$0xff] (!%p769_p9)  ;;  %s390_s5 = sld [smem:[#allocation7]] (!%p769_p9)  ;;  %v395_v28 = vstv (!%p769_p9), %s770_s0  ;;  %v399_v29 = vstv (!%p769_p9), %s771_s25 }
  0x7f   : > { %v381_v21 = vsel (!%p769_p9), %vm380_vm2, 1.0, %v379_v19  ;;  %vm427_vm3 = vcmp.gt.s32.totalorder (!%p769_p9), %v426_v22, 0  ;;  %v394_v26 = vshrl.u32 (!%p769_p9), %v393_v25, 7  ;;  %v398_v27 = vand.u32 (!%p769_p9), 127, %v393_v25 }
  0x80   : > { %v429_v24 = vsel (!%p769_p9), %vm427_vm3, 1, %v1157_v20 }
  0x81   : > { %v396_v30 = vadd.s32 (!%p769_p9), %v395_v28, %v394_v26  ;;  %v400_v31 = vadd.s32 (!%p769_p9), %v399_v29, %v398_v27 }
  0x83   : > { %v401_v32 = vmul.u32 (!%p769_p9), 2246822507, %v400_v31  ;;  %v402_v33 = vmul.u32 (!%p769_p9), 2654435769, %v396_v30 }
  0x84   : > { %s404_s30 = smul.u32 (!%p769_p9), 3266489909, %s390_s5 }
  0x85   : > { %v403_v34 = vxor.u32 (!%p769_p9), %v402_v33, %v401_v32 }
  0x86   : > { %v405_v35 = vstv (!%p769_p9), %s404_s30 }
  0x87   : > { %v406_v36 = vxor.u32 (!%p769_p9), %v405_v35, %v403_v34 }
  0x89   : > { %v407_v37 = vshrl.u32 (!%p769_p9), %v406_v36, 16 }
  0x8b   : > { %v408_v38 = vxor.u32 (!%p769_p9), %v407_v37, %v406_v36 }
  0x8d   : > { %v409_v39 = vmul.u32 (!%p769_p9), 2146121005, %v408_v38 }
  0x8f   : > { %v410_v40 = vshrl.u32 (!%p769_p9), %v409_v39, 15 }
  0x91   : > { %v411_v41 = vxor.u32 (!%p769_p9), %v410_v40, %v409_v39 }
  0x93   : > { %v412_v42 = vmul.u32 (!%p769_p9), 2221713035, %v411_v41 }
  0x95   : > { %v413_v43 = vshrl.u32 (!%p769_p9), %v412_v42, 16 }
  0x97   : > { %v414_v44 = vxor.u32 (!%p769_p9), %v413_v43, %v412_v42 }
  0x99   : > { %v415_v45 = vshrl.u32 (!%p769_p9), %v414_v44, 9 }
  0x9b   : > { %v416_v46 = vor.u32 (!%p769_p9), 1065353216, %v415_v45 }
  0x9d   : > { %v772_v47 = vadd.f32 (!%p769_p9), -1.0, %v416_v46 }
  0x9f   : > { %v419_v48 = vmax.f32 (!%p769_p9), %v772_v47, 1e-20 }
 0x103   : > { %v1414_v6 = vpop.xlane.xlu0 %352 }
 0x104   : > { %v354_v7 = vmax.f32 %v351_v5, %v1414_v6 }
 0x106   : > { %v356_v8 = vsub.f32 %v351_v5, %v354_v7  ;;  %373 = vst.msk [vmem:[#allocation2] sm:$0xff] %vm371_vm1, %v354_v7  ;;  %362 = vperm.xlu0 %915, %v354_v7  }
 0x108   : > { %v357_v13 = vmul.f32 1.442695, %v356_v8 }
 0x10a   : > { %920 = vset.pattern.permute.xlu0 (!%p769_p9), %v1157_v20 }
 0x185   : > { %v363_v9 = vpop.permute.xlu0 %362 }
 0x186   : > { %v365_v10 = vsub.f32 %v1410_v0, %v363_v9 }
 0x188   : > { %v366_v11 = vmul.f32 1.442695, %v365_v10 }
 0x18a   : > { %916 = vpow2.f32 %v366_v11 }
 0x18b   : > { %918 = vpow2.f32 %v357_v13 }
 0x18c   : > { %921 = vrcp.f32 (!%p769_p9), %v381_v21 }
 0x18d   : > { %923 = vlog2.f32 (!%p769_p9), %v419_v48 }
 0x194   : > { %v917_v12 = vpop.eup %916 }
 0x195   : > { %368 = vadd.xlane.f32.xlu1 %v917_v12  ;;  %v919_v14 = vpop.eup %918  ;;  %v455_v12 = vld [vmem:[#allocation5] sm:$0xff] (!%p769_p9) }
 0x196   : > { %v359_v16 = vmul.f32 %v919_v14, %v355_v15  ;;  %v922_v23 = vpop.eup (!%p769_p9), %921 }
 0x197   : > { %386 = vperm.xlu0 (!%p769_p9), %920, %v922_v23   ;;  %v924_v49 = vpop.eup (!%p769_p9), %923 }
 0x198   : > { %v421_v50 = vmul.f32 (!%p769_p9), 0.6931472, %v924_v49 }
 0x19a   : > { %v422_v51 = vsub.f32 (!%p769_p9), 0.0, %v421_v50 }
 0x19b   : > { %431 = vperm.xlu0 (!%p769_p9), %920, %v429_v24  }
 0x19c   : > { %925 = vlog2.f32 (!%p769_p9), %v422_v51 }
 0x1a6   : > { %v926_v52 = vpop.eup (!%p769_p9), %925 }
 0x1a7   : > { %v424_v53 = vmul.f32 (!%p769_p9), 0.6931472, %v926_v52 }
 0x1a9   : > { %v425_v54 = vsub.f32 (!%p769_p9), 0.0, %v424_v53 }
 0x216   : > { %v387_v55 = vpop.permute.xlu0 (!%p769_p9), %386 }
 0x217   : > { %v389_v56 = vmul.f32 (!%p769_p9), %v387_v55, %v1410_v0 }
 0x219   : > { %v428_v57 = vadd.f32 (!%p769_p9), %v425_v54, %v389_v56 }
 0x21a   : > { %v432_v58 = vpop.permute.xlu0 (!%p769_p9), %431 }
 0x21b   : > { %vm433_vm4 = vcmp.eq.s32.totalorder (!%p769_p9), %v432_v58, 1 }
 0x21c   : > { %v434_v59 = vsel (!%p769_p9), %vm433_vm4, %v1410_v0, %v428_v57 }
 0x21d   : > { %435 = vmax.xlane.f32.xlu1 (!%p769_p9), %v434_v59 }
 0x21f   : > { %378 = sbr.rel (%p769_p9) target bundleno = 981 (0x3d5), region = 48 }
 0x222   : > { %v369_v17 = vpop.xlane.xlu1 %368 }
 0x223   : > { %v370_v18 = vadd.f32 %v369_v17, %v359_v16 }
 0x225   : > { %372 = vst.msk [vmem:[#allocation3] sm:$0xff] %vm371_vm1, %v370_v18 }
 0x2aa   : > { %v436_v61 = vpop.xlane.xlu1 %435 }
 0x2ab   : > { %vm437_vm5 = vcmp.eq.f32.partialorder %v434_v59, %v436_v61  ;;  %vm454_vm6 = vcmp.gt.f32.partialorder %v436_v61, %v453_v60 }
 0x2ac   : > { %v459_v62 = vsel %vm454_vm6, %v436_v61, %v453_v60  ;;  %v438_v63 = vsel %vm437_vm5, %v400_v31, 2147483647 }
 0x2ad   : > { %460 = vst.msk [vmem:[#allocation4] sm:$0xff] %vm371_vm1, %v459_v62  ;;  %v440_v1 = vshra.s32 %v438_v63, 16  ;;  %v439_v3 = vand.u32 65535, %v438_v63 }
 0x2af   : > { %v442_v2 = vcvt.s32.f32 %v440_v1  ;;  %v441_v5 = vcvt.s32.f32 %v439_v3 }
 0x2b1   : > { %443 = vmin.xlane.f32.xlu1 %v442_v2 }
 0x33e   : > { %v444_v4 = vpop.xlane.xlu1 %443 }
 0x33f   : > { %vm445_vm7 = vcmp.eq.f32.partialorder %v442_v2, %v444_v4  ;;  %v450_v8 = vcvt.f32.s32 %v444_v4 }
 0x340   : > { %v446_v7 = vsel %vm445_vm7, %v441_v5, inf }
 0x341   : > { %447 = vmin.xlane.f32.xlu0 %v446_v7  ;;  %v451_v10 = vshll.u32 %v450_v8, 16 }
 0x3ce   : > { %v448_v9 = vpop.xlane.xlu0 %447 }
 0x3cf   : > { %v449_v11 = vcvt.f32.s32 %v448_v9 }
 0x3d1   : > { %v452_v13 = vadd.s32 %v451_v10, %v449_v11 }
 0x3d3   : > { %v456_v14 = vsel %vm454_vm6, %v452_v13, %v455_v12 }
 0x3d4   : > { %457 = vst.msk [vmem:[#allocation5] sm:$0xff] %vm371_vm1, %v456_v14 }
 0x3d5 PF: > { %s461_s24 = sld [smem:[#allocation8 + %s1133_s14]] }
 0x3db   : > { %p773_p3 = scmp.ne.s32.totalorder %s461_s24, 0 }
 0x3dc   : > { %v466_v15 = vlaneseq (!%p773_p3)  ;;  %s774_s9 = sshll.u32 (!%p773_p3), %s1125_s12, 7  ;;  %vm471_vm8 = vcmp.eq.f32.partialorder (!%p773_p3), %v1410_v0, %v1414_v6  ;;  %v487_v22 = vld [vmem:[#allocation4] sm:$0xff] (!%p773_p3)  ;;  %v489_v31 = vld [vmem:[#allocation5] sm:$0xff] (!%p773_p3) }
 0x3dd   : > { %465 = sbr.rel (%p773_p3) target bundleno = 1291 (0x50b), region = 52  ;;  %v469_v16 = vstv (!%p773_p3), %s774_s9  ;;  %vm488_vm9 = vcmp.gt.f32.partialorder (!%p773_p3), %v1414_v6, %v487_v22 }
 0x3de   : > { %v467_v17 = vand.u32 (!%p773_p3), 127, %v466_v15  ;;  %v493_v23 = vsel (!%p773_p3), %vm488_vm9, %v1414_v6, %v487_v22 }
 0x3df   : > { %494 = vst.msk [vmem:[#allocation4] sm:$0xff] (!%p773_p3), %vm371_vm1, %v493_v23 }
 0x3e0   : > { %v470_v18 = vadd.s32 (!%p773_p3), %v469_v16, %v467_v17 }
 0x3e2   : > { %v472_v19 = vsel (!%p773_p3), %vm471_vm8, %v470_v18, 2147483647 }
 0x3e3   : > { %v474_v20 = vshra.s32 (!%p773_p3), %v472_v19, 16  ;;  %v473_v24 = vand.u32 (!%p773_p3), 65535, %v472_v19 }
 0x3e5   : > { %v476_v21 = vcvt.s32.f32 %v474_v20  ;;  %v475_v25 = vcvt.s32.f32 %v473_v24 }
 0x3e7   : > { %477 = vmin.xlane.f32.xlu0 %v476_v21 }
 0x474   : > { %v478_v26 = vpop.xlane.xlu0 %477 }
 0x475   : > { %vm479_vm10 = vcmp.eq.f32.partialorder %v476_v21, %v478_v26  ;;  %v484_v28 = vcvt.f32.s32 %v478_v26 }
 0x476   : > { %v480_v27 = vsel %vm479_vm10, %v475_v25, inf }
 0x477   : > { %481 = vmin.xlane.f32.xlu0 %v480_v27  ;;  %v485_v29 = vshll.u32 %v484_v28, 16 }
 0x504   : > { %v482_v0 = vpop.xlane.xlu0 %481 }
 0x505   : > { %v483_v30 = vcvt.f32.s32 %v482_v0 }
 0x507   : > { %v486_v32 = vadd.s32 %v485_v29, %v483_v30 }
 0x509   : > { %v490_v33 = vsel %vm488_vm9, %v486_v32, %v489_v31 }
 0x50a   : > { %491 = vst.msk [vmem:[#allocation5] sm:$0xff] %vm371_vm1, %v490_v33 }
 0x50b PF: > { %p775_p8 = scmp.ne.s32.totalorder %s1129_s13, 1 }
 0x50c   : > { %v500_v6 = vld [vmem:[#allocation2] sm:$0xff] (!%p775_p8)  ;;  %v509_v34 = vld [vmem:[#allocation3] sm:$0xff] (!%p775_p8)  ;;  %v1158_v35 = vmov (!%p775_p8), 0   ;;  %s1606_s6 = scalar_lea.vmem (!%p775_p8), [#allocation9], %s1376_s26  ;;  %p776_p0 = scmp.ne.s32.totalorder (!%p775_p8), %s1125_s12, 0 }
 0x50d   : > { %498 = sbr.rel (%p775_p8) target bundleno = 1440 (0x5a0), region = 56  ;;  %927 = vset.pattern.permute.xlu0 (!%p775_p8), %v1158_v35  ;;  %929 = vrcp.f32 (!%p775_p8), %v509_v34  ;;  %928 = vset.pattern.permute.xlu1 (!%p775_p8), %v1158_v35  ;;  %v499_v39 = vld [vmem:[%s1606_s6] sm:$0xff] (!%p775_p8) }
 0x50e   : > { %503 = vperm.xlu0 (!%p775_p8), %927, %v500_v6   ;;  %931 = vlog2.f32 (!%p775_p8), %v509_v34 }
 0x514   : > { %v532_v48 = vld [vmem:[#allocation5] sm:$0xff] (!%p776_p0)  ;;  %vm533_vm11 = vcmask (!%p776_p0), 7168  }
 0x515   : > { %534 = vst.msk [vmem:[%s336_s2] sm:$0xff] (!%p776_p0), %vm533_vm11, %v532_v48 }
 0x517   : > { %v930_v36 = vpop.eup %929 }
 0x518   : > { %v932_v37 = vpop.eup %931  ;;  %514 = vperm.xlu0 %927, %v930_v36  }
 0x519   : > { %v520_v38 = vmul.f32 0.6931472, %v932_v37 }
 0x51b   : > { %523 = vperm.xlu1 %928, %v520_v38  }
 0x58d   : > { %v504_v40 = vpop.permute.xlu0 %503 }
 0x58e   : > { %v506_v41 = vsub.f32 %v499_v39, %v504_v40 }
 0x590   : > { %v507_v42 = vmul.f32 1.442695, %v506_v41 }
 0x592   : > { %933 = vpow2.f32 %v507_v42 }
 0x597   : > { %v515_v46 = vpop.permute.xlu0 %514 }
 0x599   : > { %531 = sbr.rel (%p776_p0) target bundleno = 1440 (0x5a0), region = 60 }
 0x59a   : > { %v524_v43 = vpop.permute.xlu1 %523 }
 0x59b   : > { %v526_v44 = vsub.f32 %v506_v41, %v524_v43 }
 0x59c   : > { %v934_v45 = vpop.eup %933 }
 0x59d   : > { %v517_v47 = vmul.f32 %v934_v45, %v515_v46  ;;  %527 = vst [vmem:[%s1405_s15] sm:$0xff] %v526_v44 }
 0x59f   : > { %518 = vst [vmem:[%s1403_s17] sm:$0xff] %v517_v47 }
 0x5a0 PF: > { %s552_s21 = smul.u32 %s1125_s12, %s1129_s13  ;;  %s779_s27 = sshll.u32 %s1133_s14, 2 }
 0x5a1   : > { %s561_s0 = sshll.u32 %s1403_s17, 4  ;;  %s1607_s30 = sld [smem:[#allocation28_spill]]  ;;  %s1462_s0 = int_to_ptr.vmem [resolvable:$true] %s561_s0 }
 0x5a2   : > { %s557_s25 = sadd.s32 %s779_s27, %s552_s21  ;;  %s1608_s16 = sld [smem:[#allocation29_spill]] }
 0x5a3   : > { %s780_s5 = sshll.u32 %s557_s25, 7  ;;  %s536_s12 = scalar_lea.sflag [#allocation11], %s1384_s23 }
 0x5a4   : > { %s977_s13 = scalar_lea.vmem %s1462_s0, 128  ;;  %p1610_p10 = scmp.ne.s32.totalorder %s1595_s22, 0 }
 0x5a5   : > { %p978_p2 = scmp.ne.s32.totalorder %s1462_s0, %s977_s13  ;;  %s1159_s14 = smov [#allocation12]  }
 0x5a6   : > { %s981_s17 = sshll.u32 %s1159_s14, 4  ;;  %s982_s17 = int_to_ptr.vmem [resolvable:$false] %s981_s17 }
 0x5a7   : > { %s1467_s24 = scalar_lea.hbm %s1607_s30, %s780_s5  ;;  %p979_p4 = pnand %p978_p2, %p1610_p10 }
 0x5a8   : > { %s1609_s26 = smov %s1608_s16  ;;  %s1472_s3 = scalar_lea.hbm %s1608_s16, %s780_s5 }
 0x5a9   : > { %p980_p6 = pneg %p979_p4  ;;  %s983_s21 = scalar_lea.vmem %s982_s17, 256 }
 0x5aa   : > { %p984_p11 = scmp.lt.s32.totalorder %s1462_s0, %s982_s17  ;;  %p985_p13 = scmp.lt.s32.totalorder %s983_s21, %s977_s13 }
 0x5ac   : > { %p986_p1 = por %p985_p13, %p984_p11 }
 0x5ae   : > { %p987_p5 = pnand %p986_p1, %p980_p6 }
 0x5b0   : > { %990 = shalt.err (!%p987_p5)
}
 0x5b1   : > { %s991_s27 = scalar_lea.hbm %s1467_s24, 128  ;;  %s995_s20 = scalar_lea.hbm %s1607_s30, 1024 }
 0x5b2   : > { %p992_p12 = scmp.ne.s32.totalorder %s1467_s24, %s991_s27  ;;  %p996_p3 = scmp.lt.u32.totalorder %s1467_s24, %s1607_s30 }
 0x5b3   : > { %p997_p8 = scmp.lt.u32.totalorder %s995_s20, %s991_s27  ;;  %p999_p2 = scmp.lt.u32.totalorder %s991_s27, %s1467_s24 }
 0x5b4   : > { %p993_p7 = pnand %p992_p12, %p1610_p10 }
 0x5b5   : > { %p998_p0 = por %p997_p8, %p996_p3 }
 0x5b6   : > { %p994_p9 = pneg %p993_p7 }
 0x5b7   : > { %p1000_p4 = por %p999_p2, %p998_p0 }
 0x5b9   : > { %p1001_p6 = pnand %p1000_p4, %p994_p9 }
 0x5bb   : > { %1004 = shalt.err (!%p1001_p6)
}
 0x5bc   : > { %787 = dma.vmem_to_hbm [thread:$0]  (%p1610_p10), %s1462_s0, 128, %s1467_s24, %s536_s12  }
 0x5bd   : > { %s577_s6 = sshll.u32 %s1405_s15, 4  ;;  %s541_s16 = scalar_lea.sflag [#allocation14], %s1384_s23  ;;  %s578_s6 = int_to_ptr.vmem [resolvable:$true] %s577_s6 }
 0x5be   : > { %s1005_s13 = scalar_lea.vmem %s578_s6, 128  ;;  %s1160_s14 = smov [#allocation13]  }
 0x5bf   : > { %p1006_p11 = scmp.ne.s32.totalorder %s578_s6, %s1005_s13  ;;  %s1009_s17 = sshll.u32 %s1160_s14, 4  ;;  %s1010_s17 = int_to_ptr.vmem [resolvable:$false] %s1009_s17 }
 0x5c0   : > { %s1011_s21 = scalar_lea.vmem %s1010_s17, 256  ;;  %p1012_p5 = scmp.lt.s32.totalorder %s578_s6, %s1010_s17 }
 0x5c1   : > { %p1007_p13 = pnand %p1006_p11, %p1610_p10  ;;  %p1013_p12 = scmp.lt.s32.totalorder %s1011_s21, %s1005_s13 }
 0x5c3   : > { %p1008_p1 = pneg %p1007_p13  ;;  %p1014_p7 = por %p1013_p12, %p1012_p5 }
 0x5c5   : > { %p1015_p9 = pnand %p1014_p7, %p1008_p1 }
 0x5c7   : > { %1018 = shalt.err (!%p1015_p9)
}
 0x5c8   : > { %s1019_s15 = scalar_lea.hbm %s1472_s3, 128  ;;  %s1023_s24 = scalar_lea.hbm %s1609_s26, 1024 }
 0x5c9   : > { %p1020_p3 = scmp.ne.s32.totalorder %s1472_s3, %s1019_s15  ;;  %p1024_p2 = scmp.lt.u32.totalorder %s1472_s3, %s1609_s26 }
 0x5ca   : > { %p1025_p4 = scmp.lt.u32.totalorder %s1023_s24, %s1019_s15  ;;  %p1027_p11 = scmp.lt.u32.totalorder %s1019_s15, %s1472_s3 }
 0x5cb   : > { %p1021_p8 = pnand %p1020_p3, %p1610_p10 }
 0x5cc   : > { %p1026_p6 = por %p1025_p4, %p1024_p2 }
 0x5cd   : > { %p1022_p0 = pneg %p1021_p8 }
 0x5ce   : > { %p1028_p13 = por %p1027_p11, %p1026_p6 }
 0x5d0   : > { %p1029_p1 = pnand %p1028_p13, %p1022_p0 }
 0x5d2   : > { %1032 = shalt.err (!%p1029_p1)
}
 0x5d3   : > { %788 = dma.vmem_to_hbm [thread:$0]  (%p1610_p10), %s578_s6, 128, %s1472_s3, %s541_s16  }
 0x5d4 PF: > { %s1611_s25 = sld [smem:[#allocation19_spill]]  ;;  %p803_p5 = scmp.ge.s32.totalorder %s1149_s18, 2 }
 0x5d5   : > { %p1612_p12 = scmp.ne.s32.totalorder %s1598_s29, 0 }
 0x5d7   : > { %p796_p7 = pnand %p803_p5, %p1612_p12 }
 0x5da   : > { %s592_s5 = sand.u32 1, %s1611_s25  }
 0x5db   : > { %s593_s20 = scalar_lea.sflag [#allocation11], %s592_s5 }
 0x5dc   : > { %1092 = dma.done.wait (!%p796_p7), %s593_s20, 128  }
 0x5dd   : > { %1094 = vsyncadd (!%p796_p7), %s593_s20, 4294967168  ;;  %s602_s2 = scalar_lea.sflag [#allocation14], %s592_s5 }
 0x5de   : > { %1096 = dma.done.wait (!%p796_p7), %s602_s2, 128  }
 0x5df   : > { %1098 = vsyncadd (!%p796_p7), %s602_s2, 4294967168  ;;  %s34_s18 = sadd.s32 1, %s1149_s18   ;;  %s1614_s12 = sld [smem:[#allocation20_spill]] }
 0x5e0   : > { %p1520_p9 = scmp.ge.s32.totalorder %s34_s18, 18   ;;  %s1615_s13 = sld [smem:[#allocation21_spill]] }
 0x5e1   : > { %s1616_s14 = sld [smem:[#allocation22_spill]]  ;;  %s1617_s15 = sld [smem:[#allocation23_spill]] }
 0x5e2   : > { %s1618_s16 = sld [smem:[#allocation24_spill]]  ;;  %s1619_s17 = sld [smem:[#allocation25_spill]] }
 0x5e3   : > { %s1620_s0 = smov %s1105_s1  ;;  %s1621_s1 = smov %s1109_s8 }
 0x5e4   : > { %s1622_s8 = smov %s1321_s19  ;;  %s1623_s9 = smov %s1117_s10 }
 0x5e5   : > { %s1624_s10 = smov %s1121_s11  ;;  %s1625_s11 = smov %s1318_s28 }
 0x5e6   :  { %33 = sbr.rel (!%p1520_p9) target bundleno = 29 (0x1d), region = 136 }
 0x5ed   :  { %614 = vsyncpa [#allocation10], 1 }
 0x5ee   :  { %616 = vsyncpa [#allocation10 + $0x1], 1 }
 0x5ef   :  { %617 = vsyncpa [#allocation11], 1 }
 0x5f0   :  { %619 = vsyncpa [#allocation11 + $0x1], 1 }
 0x5f1   :  { %620 = vsyncpa [#allocation14], 1 }
 0x5f2   :  { %622 = vsyncpa [#allocation14 + $0x1], 1 }

</bundles_post_ra>
